<compile_context>
chip_gen: v7x
topology: tpu7x:2x2x1
jax: 0.10.0
libtpu: 0.0.40
codegen_flags: <defaults>
</compile_context>

<pallas_src>
import functools

import jax
import jax.numpy as jnp
from jax.experimental import pallas as pl
from jax.experimental.pallas import tpu as pltpu

HIDDEN = 32


def _round_up(x, m):
    return (x + m - 1) // m * m


# Row offsets of the packed-parameter segments (8-aligned).
_R2 = _round_up(HIDDEN + 1, 8)          # start of W2aug^T  (=40)
_R3 = _R2 + _round_up(HIDDEN + 1, 8)    # start of w3aug row (=80)
_RTOT = _R3 + 8                         # packed rows (=88)


# ---------------------------------------------------------------------------
# Kernel
# ---------------------------------------------------------------------------
def _mlp_kernel(x_ref, p_ref, o_ref, *, d_in):
    """One batch tile of the 3-layer MLP, feature-major (batch on lanes).

    x_ref : (D+1, TB)  states^T with a ones row appended (layer-1 bias input)
    p_ref : (R, C)     packed params:
                         rows [0:H+1]        = [W1^T | b1 ; 0...0 1]   (H+1, D+1)
                         rows [_R2:_R2+H+1]  = [W2^T | b2 ; 0...0 1]   (H+1, H+1)
                         row  [_R3]          = [w3^T | b3]             (1,  H+1)
    o_ref : (1, TB)    per-state values, lane-dense
    """
    x = x_ref[...]                                         # (D+1, TB)
    w1t = p_ref[0:HIDDEN + 1, 0:d_in]                      # (H+1, D+1)
    w2t = p_ref[_R2:_R2 + HIDDEN + 1, 0:HIDDEN + 1]        # (H+1, H+1)
    w3r = p_ref[_R3:_R3 + 1, 0:HIDDEN + 1]                 # (1,   H+1)

    hp = jax.lax.Precision.HIGHEST
    # Biases ride inside the matmuls; row H of h1/h2 is an all-ones row.
    h1 = jnp.maximum(
        jnp.dot(w1t, x, precision=hp, preferred_element_type=jnp.float32), 0.0)
    h2 = jnp.maximum(
        jnp.dot(w2t, h1, precision=hp, preferred_element_type=jnp.float32), 0.0)
    o_ref[...] = jnp.dot(w3r, h2, precision=hp,
                         preferred_element_type=jnp.float32)


# ---------------------------------------------------------------------------
# pallas_call wrapper
# ---------------------------------------------------------------------------
@functools.partial(jax.jit, static_argnames=("tb",))
def _forward_impl(x, packed, *, tb):
    """x: (B, D) float32; packed: (R, C) float32. Returns (B,) values."""
    B, D = x.shape
    R, C = packed.shape
    d_in = D + 1
    # One-time feature-major layout + folded layer-1 bias input (ones row).
    x_aug = jnp.concatenate([x.T, jnp.ones((1, B), jnp.float32)], axis=0)

    out = pl.pallas_call(
        functools.partial(_mlp_kernel, d_in=d_in),
        out_shape=jax.ShapeDtypeStruct((1, B), jnp.float32),
        grid=(pl.cdiv(B, tb),),
        in_specs=[
            pl.BlockSpec((d_in, tb), lambda i: (0, i)),   # stream batch tiles (lane axis)
            pl.BlockSpec((R, C), lambda i: (0, 0)),       # params: one DMA, VMEM-resident
        ],
        out_specs=pl.BlockSpec((1, tb), lambda i: (0, i)),  # lane-dense output row
        compiler_params=pltpu.CompilerParams(
            dimension_semantics=("parallel",)),
    )(x_aug, packed)
    return out[0]


def _pick_tile(B, tb):
    """Static tile choice: big tiles for throughput, >=2 tiles when possible (v7x)."""
    if B > tb:
        return tb                 # tb must be a multiple of 128
    if B >= 256 and B % 256 == 0:
        return B // 2             # two full 128-aligned tiles -> both v7x TensorCores
    return B                      # single full-array block (any B, incl. B == 1)


# ---------------------------------------------------------------------------
# Parameter handling
# ---------------------------------------------------------------------------
def init_params(key, state_dims):
    """Deterministic init matching PyTorch nn.Linear default (U(-1/sqrt(in), 1/sqrt(in)))."""
    ks = jax.random.split(key, 6)

    def lin(kw, kb, fan_in, fan_out):
        bound = 1.0 / (fan_in ** 0.5)
        w = jax.random.uniform(kw, (fan_in, fan_out), jnp.float32, -bound, bound)
        b = jax.random.uniform(kb, (fan_out,), jnp.float32, -bound, bound)
        return w, b

    w1, b1 = lin(ks[0], ks[1], state_dims, HIDDEN)
    w2, b2 = lin(ks[2], ks[3], HIDDEN, HIDDEN)
    w3, b3 = lin(ks[4], ks[5], HIDDEN, 1)
    return (w1, b1, w2, b2, w3, b3[0])


def pack_params(params):
    """Pack transposed+augmented layer params into one (R, C) float32 array."""
    w1, b1, w2, b2, w3, b3 = params
    D = w1.shape[0]
    H = HIDDEN
    d_in = D + 1
    C = max(H + 1, d_in)

    p = jnp.zeros((_RTOT, C), jnp.float32)

    # Layer 1: [W1^T | b1] plus a zero-weight/one-bias row that emits the ones row.
    w1aug = jnp.zeros((H + 1, d_in), jnp.float32)
    w1aug = w1aug.at[:H, :D].set(w1.T)
    w1aug = w1aug.at[:H, D].set(b1)
    w1aug = w1aug.at[H, D].set(1.0)
    p = p.at[0:H + 1, 0:d_in].set(w1aug)

    # Layer 2: [W2^T | b2] plus the ones-propagating row.
    w2aug = jnp.zeros((H + 1, H + 1), jnp.float32)
    w2aug = w2aug.at[:H, :H].set(w2.T)
    w2aug = w2aug.at[:H, H].set(b2)
    w2aug = w2aug.at[H, H].set(1.0)
    p = p.at[_R2:_R2 + H + 1, 0:H + 1].set(w2aug)

    # Layer 3: [w3^T | b3] as a single row.
    w3row = jnp.concatenate([w3[:, 0], jnp.reshape(b3, (1,)).astype(jnp.float32)])
    p = p.at[_R3, 0:H + 1].set(w3row)
    return p


# ---------------------------------------------------------------------------
# Public forward functions
# ---------------------------------------------------------------------------
def v_forward_batch(states_batch, packed, *, tb=2048):
    """Amortized path: many states per pallas_call (weights stay VMEM-resident)."""
    x = jnp.asarray(states_batch, jnp.float32)
    B = x.shape[0]
    return _forward_impl(x, packed, tb=_pick_tile(B, tb))


def v_forward(states, packed):
    """Matches VApproximationWithNN.forward: 1-D state vector -> scalar value.

    Latency-floor path (single grid step); batch via v_forward_batch when possible.
    """
    x = jnp.asarray(states, jnp.float32).reshape(1, -1)
    return v_forward_batch(x, packed)[0]


# ---------------------------------------------------------------------------
# Pure-JAX reference
# ---------------------------------------------------------------------------
def _reference_batch(x, params):
    w1, b1, w2, b2, w3, b3 = params
    hp = jax.lax.Precision.HIGHEST
    h1 = jnp.maximum(jnp.dot(x, w1, precision=hp) + b1, 0.0)
    h2 = jnp.maximum(jnp.dot(h1, w2, precision=hp) + b2, 0.0)
    return jnp.dot(h2, w3, precision=hp)[:, 0] + b3


if __name__ == "__main__":
    key = jax.random.PRNGKey(0)
    k_param, k_state, k_batch = jax.random.split(key, 3)

    state_dims = 4
    params = init_params(k_param, state_dims)
    packed = pack_params(params)

    # Single-state forward (original module semantics: states -> scalar value).
    states = jax.random.normal(k_state, (state_dims,), jnp.float32)
    val = jax.block_until_ready(v_forward(states, packed))
    ref = _reference_batch(states.reshape(1, -1), params)[0]
    assert jnp.allclose(val, ref, atol=1e-4, rtol=1e-4), (val, ref)

    # Batched / amortized path: one pallas_call, weights resident, lane-dense output,
    # two full tiles (exercises the parallel batch grid / both v7x TensorCores).
    B = 256
    states_b = jax.random.normal(k_batch, (B, state_dims), jnp.float32)
    vals = jax.block_until_ready(v_forward_batch(states_b, packed))
    refs = _reference_batch(states_b, params)
    assert vals.shape == (B,)
    assert jnp.allclose(vals, refs, atol=1e-4, rtol=1e-4), (vals, refs)

    print("KERNEL_OK")
</pallas_src>

<mosaic_0001>
module attributes {stable_mosaic.version = 11 : i64} {
  func.func @_mlp_kernel(%arg0: i32, %arg1: memref<5x1xf32, #tpu.memory_space<vmem>>, %arg2: memref<88x33xf32, #tpu.memory_space<vmem>>, %arg3: memref<1x1xf32, #tpu.memory_space<vmem>>) attributes {dimension_semantics = [#tpu.dimension_semantics<parallel>], iteration_bounds = array<i64: 1>, scalar_prefetch = 0 : i64, scratch_operands = 0 : i64, tpu.core_type = #tpu.core_type<tc>, window_params = [{transform_indices = @transform_0, window_bounds = array<i64: 5, 1>}, {pipeline_mode = #tpu.pipeline_mode<synchronous>, transform_indices = @transform_1, window_bounds = array<i64: 88, 33>}, {transform_indices = @transform_2, window_bounds = array<i64: 1, 1>}]} {
    %c0 = arith.constant 0 : index
    %c0_0 = arith.constant 0 : index
    %0 = vector.load %arg1[%c0, %c0_0] : memref<5x1xf32, #tpu.memory_space<vmem>>, vector<5x1xf32>
    %c0_1 = arith.constant 0 : index
    %c0_2 = arith.constant 0 : index
    %1 = vector.load %arg2[%c0_1, %c0_2] : memref<88x33xf32, #tpu.memory_space<vmem>>, vector<33x5xf32>
    %c40 = arith.constant 40 : index
    %c0_3 = arith.constant 0 : index
    %2 = vector.load %arg2[%c40, %c0_3] : memref<88x33xf32, #tpu.memory_space<vmem>>, vector<33x33xf32>
    %c80 = arith.constant 80 : index
    %c0_4 = arith.constant 0 : index
    %3 = vector.load %arg2[%c80, %c0_4] : memref<88x33xf32, #tpu.memory_space<vmem>>, vector<1x33xf32>
    %cst = arith.constant dense<0.000000e+00> : vector<33x1xf32>
    %4 = tpu.matmul %1, %0, %cst {dimension_numbers = #tpu.dot_dimension_numbers<[1], [0], [0], [1], [0, 0, 1, 1], [], []>, precision = #tpu.contract_precision<fp32>} : vector<33x5xf32>, vector<5x1xf32>, vector<33x1xf32> -> vector<33x1xf32>
    %cst_5 = arith.constant 0.000000e+00 : f32
    %5 = vector.broadcast %cst_5 : f32 to vector<33x1xf32>
    %6 = arith.maximumf %4, %5 : vector<33x1xf32>
    %cst_6 = arith.constant dense<0.000000e+00> : vector<33x1xf32>
    %7 = tpu.matmul %2, %6, %cst_6 {dimension_numbers = #tpu.dot_dimension_numbers<[1], [0], [0], [1], [0, 0, 1, 1], [], []>, precision = #tpu.contract_precision<fp32>} : vector<33x33xf32>, vector<33x1xf32>, vector<33x1xf32> -> vector<33x1xf32>
    %cst_7 = arith.constant 0.000000e+00 : f32
    %8 = vector.broadcast %cst_7 : f32 to vector<33x1xf32>
    %9 = arith.maximumf %7, %8 : vector<33x1xf32>
    %cst_8 = arith.constant dense<0.000000e+00> : vector<1x1xf32>
    %10 = tpu.matmul %3, %9, %cst_8 {dimension_numbers = #tpu.dot_dimension_numbers<[1], [0], [0], [1], [0, 0, 1, 1], [], []>, precision = #tpu.contract_precision<fp32>} : vector<1x33xf32>, vector<33x1xf32>, vector<1x1xf32> -> vector<1x1xf32>
    %c0_9 = arith.constant 0 : index
    %c0_10 = arith.constant 0 : index
    %11 = vector.load %arg3[%c0_9, %c0_10] : memref<1x1xf32, #tpu.memory_space<vmem>>, vector<1x1xf32>
    tpu.vector_store %arg3[%c0_9, %c0_10], %10 {strides = array<i32>} : memref<1x1xf32, #tpu.memory_space<vmem>>, vector<1x1xf32>,
    return
  }
  func.func @transform_0(%arg0: i32) -> (i32, i32) {
    %c0_i32 = arith.constant 0 : i32
    %c0_i32_0 = arith.constant 0 : i32
    return %c0_i32, %arg0 : i32, i32
  }
  func.func @transform_1(%arg0: i32) -> (i32, i32) {
    %c0_i32 = arith.constant 0 : i32
    %c0_i32_0 = arith.constant 0 : i32
    %c0_i32_1 = arith.constant 0 : i32
    return %c0_i32, %c0_i32_0 : i32, i32
  }
  func.func @transform_2(%arg0: i32) -> (i32, i32) {
    %c0_i32 = arith.constant 0 : i32
    %c0_i32_0 = arith.constant 0 : i32
    return %c0_i32, %arg0 : i32, i32
  }
}

</mosaic_0001>

<bundles_post_ra>
// kernel: _forward_impl.1
= control target key start
LH: loop header
LB: loop body
LE: loop exit
PB: predicated region body
PF: predicated region fallthrough
CT: control target
= control target key end

     0   :  { %vm40_vm0 = vcmask 1044480   ;;  %v2548_v2 = vmov 0.0   ;;  %vm2549_vm1 = vmmov 0   ;;  %vm24_vm2 = vcmask 39936   ;;  %s2993_s0 = inlined_call_operand.vmem [shape: f32[5,1], index: 0, kind: input, shape index: {}]   ;;  %s2994_s1 = inlined_call_operand.vmem [shape: f32[88,33], index: 1, kind: input, shape index: {}]   ;;  %s2995_s2 = inlined_call_operand.hbm [shape: f32[1,1], index: 2, kind: output, shape index: {}]  }
   0x1   :  { %v12_v0 = vld [vmem:[%s2993_s0] sm:$0x1f]  ;;  %2031 = vmatprep.subr.mxu0 %v2548_v2  ;;  %2033 = vmatprep.mubr.msk.f32.mxu0 %vm2549_vm1, %v2548_v2  ;;  %v14_v4 = vld [vmem:[%s2994_s1 + $0x8] sm:$0xff]  ;;  %v15_v9 = vld [vmem:[%s2994_s1 + $0x10] sm:$0xff] }
   0x2   :  { %v13_v1 = vld [vmem:[%s2994_s1] sm:$0xff]  ;;  %v42_v3 = vsel %vm40_vm0, %v12_v0, 0  ;;  %v29_v7 = vsel %vm24_vm2, %v14_v4, 0  ;;  %2014 = vmatprep.subr.mxu1 %v2548_v2  ;;  %2016 = vmatprep.mubr.msk.f32.mxu1 %vm2549_vm1, %v2548_v2 }
   0x3   :  { %v2579_v5 = vand.u32 4294901760, %v42_v3  ;;  %v26_v6 = vsel %vm24_vm2, %v13_v1, 0 }
   0x4   :  { %v2586_v8 = vand.u32 4294901760, %v26_v6 }
   0x5   :  { %7 = vsyncpa [#allocation3], 0  ;;  %v2592_v10 = vsub.f32 %v42_v3, %v2579_v5  ;;  %2015 = vmatpush3.msra.mxu1 %v2579_v5  ;;  %v2598_v12 = vand.u32 4294901760, %v29_v7  ;;  %v32_v14 = vsel %vm24_vm2, %v15_v9, 0  ;;  %v16_v15 = vld [vmem:[%s2994_s1 + $0x18] sm:$0xff]  ;;  %v2550_v43 = vmov 0.0|0.0  }
   0x6   :  { %v2596_v11 = vsub.f32 %v26_v6, %v2586_v8  ;;  %v2612_v19 = vand.u32 4294901760, %v32_v14  ;;  %v35_v23 = vsel %vm24_vm2, %v16_v15, 0  ;;  %v17_v24 = vld [vmem:[%s2994_s1 + $0x20] sm:$0x1]  ;;  %2344 = vmatprep.subr.bf16.mxu1 %v2550_v43  ;;  %v18_v54 = vld [vmem:[%s2994_s1 + $0x28] sm:$0xff]  ;;  %vm667_vm3 = vcmask 269312  }
   0x7   :  { %v163_v13 = vand.u32 4294901760, %v2592_v10  ;;  %v2606_v16 = vsub.f32 %v29_v7, %v2598_v12  ;;  %v2624_v28 = vand.u32 4294901760, %v35_v23  ;;  %v38_v30 = vsel %vm24_vm2, %v17_v24, 0  ;;  %v19_v59 = vld [vmem:[%s2994_s1 + $0x30] sm:$0xff]  ;;  %v20_v9 = vld [vmem:[%s2994_s1 + $0x38] sm:$0xff] }
   0x8   :  { %v112_v17 = vand.u32 4294901760, %v2596_v11  ;;  %v131_v25 = vsub.f32 %v32_v14, %v2612_v19  ;;  %v2635_v34 = vand.u32 4294901760, %v38_v30  ;;  %v669_v58 = vsel %vm667_vm3, %v18_v54, 0 }
   0x9   :  { %v164_v18 = vsub.f32 %v2592_v10, %v163_v13  ;;  %v122_v20 = vand.u32 4294901760, %v2606_v16  ;;  %v141_v31 = vsub.f32 %v35_v23, %v2624_v28  ;;  %v2724_v62 = vand.u32 4294901760, %v669_v58 }
   0xa   :  { %v113_v21 = vsub.f32 %v2596_v11, %v112_v17  ;;  %v132_v29 = vand.u32 4294901760, %v131_v25  ;;  %v151_v36 = vsub.f32 %v38_v30, %v2635_v34  ;;  %v672_v3 = vsel %vm667_vm3, %v19_v59, 0 }
   0xb   :  { %v165_v22 = vand.u32 4294901760, %v164_v18  ;;  %v123_v27 = vsub.f32 %v2606_v16, %v122_v20  ;;  %v142_v35 = vand.u32 4294901760, %v141_v31  ;;  %v2730_v7 = vsub.f32 %v669_v58, %v2724_v62  ;;  %v21_v18 = vld [vmem:[%s2994_s1 + $0x40] sm:$0xff] }
   0xc   :  { %v114_v26 = vand.u32 4294901760, %v113_v21  ;;  %v133_v33 = vsub.f32 %v131_v25, %v132_v29  ;;  %v152_v39 = vand.u32 4294901760, %v151_v36  ;;  %vm683_vm4 = vcmask 1040384  }
   0xd   :  { %2032 = vmatpush3.msra.mxu0 %v165_v22  ;;  %v124_v32 = vand.u32 4294901760, %v123_v27  ;;  %v143_v38 = vsub.f32 %v141_v31, %v142_v35  ;;  %vm1866_vm5 = vcmask 0  }
   0xe   :  { %2034 = vmatmul.mubr.f32.vlgmr.msra.gmra.mrb[0].mxu0 %v2586_v8  ;;  %2048 = vmatprep.subr.mxu0 %v2548_v2  ;;  %v134_v37 = vand.u32 4294901760, %v133_v33  ;;  %v153_v41 = vsub.f32 %v151_v36, %v152_v39 }
   0xf   :  { %2036 = vmatprep.mubr.msk.f32.mxu0 %vm2549_vm1, %v2548_v2  ;;  %2049 = vmatpush3.msra.mxu0 %v2592_v10  ;;  %v144_v40 = vand.u32 4294901760, %v143_v38 }
  0x10   :  { %2065 = vmatprep.subr.mxu0 %v2548_v2  ;;  %2017 = vmatmul.mubr.f32.vlgmr.msra.gmra.mrb[0].mxu1 %v114_v26  ;;  %v154_v42 = vand.u32 4294901760, %v153_v41 }
  0x11   :  { %2019 = vmatprep.mubr.msk.f32.mxu1 %vm2549_vm1, %v2548_v2 }
  0x12   :  { %2037 = vmatmul.mubr.f32.gmra.mrb[2].mxu0 %v2598_v12 }
  0x13   :  { %2039 = vmatprep.mubr.msk.f32.mxu0 %vm2549_vm1, %v2548_v2 }
  0x14   :  { %2020 = vmatmul.mubr.f32.gmra.mrb[2].mxu1 %v124_v32 }
  0x15   :  { %2022 = vmatprep.mubr.msk.f32.mxu1 %vm2549_vm1, %v2548_v2 }
  0x16   :  { %2040 = vmatmul.mubr.f32.gmra.mrb[4].mxu0 %v2612_v19 }
  0x17   :  { %2042 = vmatprep.mubr.msk.f32.mxu0 %vm2549_vm1, %v2548_v2 }
  0x18   :  { %2023 = vmatmul.mubr.f32.gmra.mrb[4].mxu1 %v134_v37  ;;  %v22_v37 = vld [vmem:[%s2994_s1 + $0x48] sm:$0x1] }
  0x19   :  { %2025 = vmatprep.mubr.msk.f32.mxu1 %vm2549_vm1, %v2548_v2 }
  0x1a   :  { %2043 = vmatmul.mubr.f32.gmra.mrb[6].mxu0 %v2624_v28 }
  0x1b   :  { %2045 = vmatprep.mubr.msk.f32.mxu0 %vm2549_vm1, %v2548_v2 }
  0x1c   :  { %2026 = vmatmul.mubr.f32.gmra.mrb[6].mxu1 %v144_v40 }
  0x1d   :  { %2028 = vmatprep.mubr.msk.f32.mxu1 %vm2549_vm1, %v2548_v2 }
  0x1e   :  { %2046 = vmatmul.mubr.f32.gmra.mrb[8].mxu0 %v2635_v34 }
  0x1f   :  { %2050 = vmatprep.mubr.msk.f32.mxu0 %vm2549_vm1, %v2548_v2 }
  0x20   :  { %2029 = vmatmul.mubr.f32.gmra.mrb[8].mxu1 %v154_v42 }
  0x21   :  { %2126 = vmatprep.mubr.msk.f32.mxu1 %vm2549_vm1, %v2548_v2 }
  0x22   :  { %2051 = vmatmul.mubr.f32.vlgmr.msra.gmra.mrb[0].mxu0 %v2596_v11 }
  0x23   :  { %2053 = vmatprep.mubr.msk.f32.mxu0 %vm2549_vm1, %v2548_v2  ;;  %2066 = vmatpush3.msra.mxu0 %v2579_v5 }
  0x24   :  { %2082 = vmatprep.subr.mxu0 %v2548_v2 }
  0x26   :  { %2054 = vmatmul.mubr.f32.gmra.mrb[2].mxu0 %v2606_v16 }
  0x27   :  { %2056 = vmatprep.mubr.msk.f32.mxu0 %vm2549_vm1, %v2548_v2 }
  0x2a   :  { %2057 = vmatmul.mubr.f32.gmra.mrb[4].mxu0 %v131_v25 }
  0x2b   :  { %2059 = vmatprep.mubr.msk.f32.mxu0 %vm2549_vm1, %v2548_v2 }
  0x2e   :  { %2060 = vmatmul.mubr.f32.gmra.mrb[6].mxu0 %v141_v31 }
  0x2f   :  { %2062 = vmatprep.mubr.msk.f32.mxu0 %vm2549_vm1, %v2548_v2 }
  0x32   :  { %2063 = vmatmul.mubr.f32.gmra.mrb[8].mxu0 %v151_v36 }
  0x33   :  { %2067 = vmatprep.mubr.msk.f32.mxu0 %vm2549_vm1, %v2548_v2 }
  0x36   :  { %2068 = vmatmul.mubr.f32.vlgmr.msra.gmra.mrb[0].mxu0 %v112_v17  ;;  %v675_v17 = vsel %vm667_vm3, %v20_v9, 0 }
  0x37   :  { %2070 = vmatprep.mubr.msk.f32.mxu0 %vm2549_vm1, %v2548_v2  ;;  %2083 = vmatpush3.msra.mxu0 %v163_v13  ;;  %v2754_v27 = vand.u32 4294901760, %v675_v17 }
  0x38   :  { %2099 = vmatprep.subr.mxu0 %v2548_v2 }
  0x3a   :  { %2071 = vmatmul.mubr.f32.gmra.mrb[2].mxu0 %v122_v20  ;;  %v759_v20 = vand.u32 4294901760, %v2730_v7 }
  0x3b   :  { %2073 = vmatprep.mubr.msk.f32.mxu0 %vm2549_vm1, %v2548_v2 }
  0x3e   :  { %2074 = vmatmul.mubr.f32.gmra.mrb[4].mxu0 %v132_v29 }
  0x3f   :  { %2076 = vmatprep.mubr.msk.f32.mxu0 %vm2549_vm1, %v2548_v2 }
  0x42   :  { %2077 = vmatmul.mubr.f32.gmra.mrb[6].mxu0 %v142_v35  ;;  %v760_v35 = vsub.f32 %v2730_v7, %v759_v20 }
  0x43   :  { %2079 = vmatprep.mubr.msk.f32.mxu0 %vm2549_vm1, %v2548_v2 }
  0x46   :  { %2080 = vmatmul.mubr.f32.gmra.mrb[8].mxu0 %v152_v39 }
  0x47   :  { %2084 = vmatprep.mubr.msk.f32.mxu0 %vm2549_vm1, %v2548_v2 }
  0x4a   :  { %2085 = vmatmul.mubr.f32.vlgmr.msra.gmra.mrb[0].mxu0 %v2586_v8 }
  0x4b   :  { %2087 = vmatprep.mubr.msk.f32.mxu0 %vm2549_vm1, %v2548_v2  ;;  %2100 = vmatpush3.msra.mxu0 %v2579_v5 }
  0x4c   :  { %2386 = vmatprep.subr.bf16.mxu0 %v2550_v43 }
  0x4e   :  { %2088 = vmatmul.mubr.f32.gmra.mrb[2].mxu0 %v2598_v12 }
  0x4f   :  { %2090 = vmatprep.mubr.msk.f32.mxu0 %vm2549_vm1, %v2548_v2 }
  0x52   :  { %2091 = vmatmul.mubr.f32.gmra.mrb[4].mxu0 %v2612_v19 }
  0x53   :  { %2093 = vmatprep.mubr.msk.f32.mxu0 %vm2549_vm1, %v2548_v2 }
  0x56   :  { %2094 = vmatmul.mubr.f32.gmra.mrb[6].mxu0 %v2624_v28 }
  0x57   :  { %2096 = vmatprep.mubr.msk.f32.mxu0 %vm2549_vm1, %v2548_v2 }
  0x5a   :  { %2097 = vmatmul.mubr.f32.gmra.mrb[8].mxu0 %v2635_v34 }
  0x5b   :  { %2101 = vmatprep.mubr.msk.f32.mxu0 %vm2549_vm1, %v2548_v2 }
  0x5e   :  { %2102 = vmatmul.mubr.f32.vlgmr.msra.gmra.mrb[0].mxu0 %v2586_v8  ;;  %v2732_v8 = vand.u32 4294901760, %v672_v3 }
  0x5f   :  { %2104 = vmatprep.mubr.msk.f32.mxu0 %vm2549_vm1, %v2548_v2 }
  0x60   :  { %v2748_v21 = vsub.f32 %v672_v3, %v2732_v8 }
  0x62   :  { %2105 = vmatmul.mubr.f32.gmra.mrb[2].mxu0 %v2598_v12  ;;  %v769_v36 = vand.u32 4294901760, %v2748_v21 }
  0x63   :  { %2107 = vmatprep.mubr.msk.f32.mxu0 %vm2549_vm1, %v2548_v2 }
  0x66   :  { %2108 = vmatmul.mubr.f32.gmra.mrb[4].mxu0 %v2612_v19 }
  0x67   :  { %2110 = vmatprep.mubr.msk.f32.mxu0 %vm2549_vm1, %v2548_v2 }
  0x6a   :  { %2111 = vmatmul.mubr.f32.gmra.mrb[6].mxu0 %v2624_v28  ;;  %v678_v28 = vsel %vm667_vm3, %v21_v18, 0 }
  0x6b   :  { %2113 = vmatprep.mubr.msk.f32.mxu0 %vm2549_vm1, %v2548_v2 }
  0x6e   :  { %2114 = vmatmul.mubr.f32.gmra.mrb[8].mxu0 %v2635_v34 }
  0x6f   :  { %2289 = vmatprep.mubr.msk.f32.mxu0 %vm2549_vm1, %v2548_v2 }
  0xe3   :  { %v116_v44 = vpop.f32.mrb[0].mxu1 }
  0xe4   :  { %v2018_v45 = vpop.f32.mrb[1].mxu1 }
  0xe5   :  { %v2773_v45 = vsub.f32 %v675_v17, %v2754_v27 }
  0xe7   :  { %v126_v46 = vpop.f32.mrb[2].mxu1  ;;  %v779_v59 = vand.u32 4294901760, %v2773_v45 }
  0xe8   :  { %v2021_v47 = vpop.f32.mrb[3].mxu1 }
  0xeb   :  { %v136_v48 = vpop.f32.mrb[4].mxu1 }
  0xec   :  { %v2024_v49 = vpop.f32.mrb[5].mxu1 }
  0xef   :  { %v146_v50 = vpop.f32.mrb[6].mxu1 }
  0xf0   :  { %v2027_v51 = vpop.f32.mrb[7].mxu1 }
  0xf1   :  { %v761_v51 = vand.u32 4294901760, %v760_v35 }
  0xf3   :  { %v156_v52 = vpop.f32.mrb[8].mxu1 }
  0xf4   :  { %v2030_v53 = vpop.f32.mrb[9].mxu1 }
 0x131   :  { %v634_v55 = vpop.f32.mrb[0].mxu0 }
 0x132   :  { %v2416_v56 = vadd.f32 %v634_v55, %v116_v44  ;;  %v2103_v57 = vpop.f32.mrb[1].mxu0 }
 0x134   :  { %v662_v60 = vmax.f32 %v2416_v56, 0.0 }
 0x135   :  { %v640_v61 = vpop.f32.mrb[2].mxu0 }
 0x136   :  { %v688_v63 = vand.u32 4294901760, %v662_v60  ;;  %v2417_v0 = vadd.f32 %v640_v61, %v126_v46  ;;  %v2106_v1 = vpop.f32.mrb[3].mxu0  ;;  %v2775_v46 = vand.u32 4294901760, %v678_v28 }
 0x138   :  { %v2727_v4 = vsub.f32 %v662_v60, %v688_v63  ;;  %v663_v5 = vmax.f32 %v2417_v0, 0.0  ;;  %v2792_v60 = vsub.f32 %v678_v28, %v2775_v46 }
 0x139   :  { %v646_v6 = vpop.f32.mrb[4].mxu0 }
 0x13a   :  { %v691_v10 = vand.u32 4294901760, %v663_v5  ;;  %v2418_v11 = vadd.f32 %v646_v6, %v136_v48  ;;  %v2109_v12 = vpop.f32.mrb[5].mxu0  ;;  %v810_v13 = vand.u32 4294901760, %v2727_v4 }
 0x13c   :  { %v2738_v14 = vpack.c.bf16 %v691_v10, %v688_v63  ;;  %v2740_v15 = vsub.f32 %v663_v5, %v691_v10  ;;  %v664_v16 = vmax.f32 %v2418_v11, 0.0  ;;  %v811_v26 = vsub.f32 %v2727_v4, %v810_v13 }
 0x13d   :  { %v652_v19 = vpop.f32.mrb[6].mxu0  ;;  %v780_v10 = vsub.f32 %v2773_v45, %v779_v59  ;;  %v789_v11 = vand.u32 4294901760, %v2792_v60 }
 0x13e   :  { %v817_v22 = vand.u32 4294901760, %v2740_v15  ;;  %v694_v23 = vand.u32 4294901760, %v664_v16  ;;  %v2419_v24 = vadd.f32 %v652_v19, %v146_v50  ;;  %v2112_v25 = vpop.f32.mrb[7].mxu0  ;;  %2346 = vmatpush3.bf16.msra.mxu1 %v2738_v14  ;;  %v2357_v29 = vpack.c.bf16 %v2740_v15, %v2727_v4 }
 0x13f   :  { %2347 = vmatprep.subr.bf16.mxu1 %v2550_v43  ;;  %v812_v44 = vand.u32 4294901760, %v811_v26  ;;  %v681_v50 = vsel %vm667_vm3, %v22_v37, 0  ;;  %v781_v17 = vand.u32 4294901760, %v780_v10  ;;  %v790_v18 = vsub.f32 %v2792_v60, %v789_v11 }
 0x140   :  { %v818_v30 = vsub.f32 %v2740_v15, %v817_v22  ;;  %v2760_v31 = vsub.f32 %v664_v16, %v694_v23  ;;  %v665_v32 = vmax.f32 %v2419_v24, 0.0  ;;  %v2762_v33 = vpack.c.bf16 %v817_v22, %v810_v13  ;;  %v23_v15 = vld [vmem:[%s2994_s1 + $0x50] sm:$0x1]  ;;  %s2551_s1 = smov [#allocation2]  }
 0x141   :  { %v658_v34 = vpop.f32.mrb[8].mxu0  ;;  %v2794_v61 = vand.u32 4294901760, %v681_v50  ;;  %v1363_v28 = vsel %vm667_vm3, %v23_v15, 0  ;;  %s1874_s4 = sshll.u32 %s2551_s1, 4  ;;  %s1875_s4 = int_to_ptr.vmem [resolvable:$true] %s1874_s4 }
 0x142   :  { %v819_v38 = vand.u32 4294901760, %v818_v30  ;;  %v824_v39 = vand.u32 4294901760, %v2760_v31  ;;  %v697_v40 = vand.u32 4294901760, %v665_v32  ;;  %v2420_v41 = vadd.f32 %v658_v34, %v156_v52  ;;  %v2115_v42 = vpop.f32.mrb[9].mxu0  ;;  %s2524_s5 = scalar_lea.vmem %s1875_s4, 16  ;;  %s2528_s6 = scalar_lea.vmem %s1875_s4, 32 }
 0x143   :  { %v770_v52 = vsub.f32 %v2748_v21, %v769_v36  ;;  %v2809_v12 = vsub.f32 %v681_v50, %v2794_v61  ;;  %v2945_v35 = vand.u32 4294901760, %v1363_v28  ;;  %p2525_p0 = scmp.ne.s32.totalorder %s1875_s4, %s2524_s5  ;;  %p2529_p1 = scmp.lt.s32.totalorder %s1875_s4, %s1875_s4 }
 0x144   :  { %v2777_v47 = vpack.c.bf16 %v697_v40, %v694_v23  ;;  %v830_v48 = vsub.f32 %v665_v32, %v697_v40  ;;  %v666_v49 = vmax.f32 %v2420_v41, 0.0  ;;  %v2351_v53 = vpack.c.bf16 %v819_v38, %v812_v44  ;;  %p2530_p2 = scmp.lt.s32.totalorder %s2528_s6, %s2524_s5 }
 0x145   :  { %v825_v54 = vsub.f32 %v2760_v31, %v824_v39  ;;  %v771_v6 = vand.u32 4294901760, %v770_v52  ;;  %v799_v19 = vand.u32 4294901760, %v2809_v12  ;;  %v791_v23 = vand.u32 4294901760, %v790_v18 }
 0x146   :  { %v831_v55 = vand.u32 4294901760, %v830_v48  ;;  %v685_v56 = vsel %vm683_vm4, %v666_v49, 0  ;;  %2349 = vmatpush3.bf16.msra.mxu1 %v2777_v47  ;;  %v2360_v57 = vpack.c.bf16 %v830_v48, %v2760_v31  ;;  %v1439_v41 = vsub.f32 %v1363_v28, %v2945_v35  ;;  %p2531_p3 = por %p2530_p2, %p2529_p1 }
 0x147   :  { %v2787_v58 = vand.u32 4294901760, %v685_v56  ;;  %2124 = vmatprep.subr.mxu1 %v2548_v2  ;;  %v826_v3 = vand.u32 4294901760, %v825_v54  ;;  %v800_v24 = vsub.f32 %v2809_v12, %v799_v19 }
 0x148   :  { %v832_v63 = vsub.f32 %v830_v48, %v831_v55  ;;  %v2796_v0 = vpack.c.bf16 %v831_v55, %v824_v39  ;;  %v1440_v48 = vand.u32 4294901760, %v1439_v41  ;;  %p2532_p4 = pnand %p2531_p3, %p2525_p0 }
 0x149   :  { %v2799_v1 = vsub.f32 %v685_v56, %v2787_v58  ;;  %v801_v25 = vand.u32 4294901760, %v800_v24 }
 0x14a   :  { %v833_v5 = vand.u32 4294901760, %v832_v63  ;;  %2125 = vmatpush3.msra.mxu1 %v2787_v58  ;;  %v1441_v54 = vsub.f32 %v1439_v41, %v1440_v48 }
 0x14b   :  { %v838_v9 = vand.u32 4294901760, %v2799_v1  ;;  %2127 = vmatmul.mubr.f32.vlgmr.msra.gmra.mrb[10].mxu1 %v761_v51  ;;  %2350 = vmatprep.subr.bf16.mxu1 %v2550_v43 }
 0x14c   :  { %2352 = vmatpush3.bf16.msra.mxu1 %v2351_v53  ;;  %2129 = vmatprep.mubr.msk.f32.mxu1 %vm2549_vm1, %v2548_v2  ;;  %v2354_v13 = vpack.c.bf16 %v833_v5, %v826_v3  ;;  %v1442_v3 = vand.u32 4294901760, %v1441_v54 }
 0x14d   :  { %2353 = vmatprep.subr.bf16.mxu1 %v2550_v43  ;;  %v839_v16 = vsub.f32 %v2799_v1, %v838_v9 }
 0x14f   :  { %2130 = vmatmul.mubr.f32.gmra.mrb[12].mxu1 %v771_v6  ;;  %v840_v22 = vand.u32 4294901760, %v839_v16 }
 0x150   :  { %2355 = vmatpush3.bf16.msra.mxu1 %v2354_v13  ;;  %2132 = vmatprep.mubr.msk.f32.mxu1 %vm2549_vm1, %v2548_v2 }
 0x151   :  { %2149 = vmatprep.subr.mxu1 %v2548_v2 }
 0x153   :  { %2133 = vmatmul.mubr.f32.gmra.mrb[14].mxu1 %v781_v17 }
 0x154   :  { %2150 = vmatpush3.msra.mxu1 %v840_v22  ;;  %2135 = vmatprep.mubr.msk.f32.mxu1 %vm2549_vm1, %v2548_v2 }
 0x155   :  { %2356 = vmatprep.subr.bf16.mxu1 %v2550_v43 }
 0x157   :  { %2136 = vmatmul.mubr.f32.gmra.mrb[16].mxu1 %v791_v23 }
 0x158   :  { %2138 = vmatprep.mubr.msk.f32.mxu1 %vm2549_vm1, %v2548_v2 }
 0x15b   :  { %2139 = vmatmul.mubr.f32.gmra.mrb[18].mxu1 %v801_v25 }
 0x15c   :  { %2151 = vmatprep.mubr.msk.f32.mxu1 %vm2549_vm1, %v2548_v2 }
 0x15f   :  { %2152 = vmatmul.mubr.f32.vlgmr.msra.gmra.mrb[10].mxu1 %v2724_v62 }
 0x160   :  { %2358 = vmatpush3.bf16.msra.mxu1 %v2357_v29  ;;  %2154 = vmatprep.mubr.msk.f32.mxu1 %vm2549_vm1, %v2548_v2 }
 0x161   :  { %2359 = vmatprep.subr.bf16.mxu1 %v2550_v43 }
 0x163   :  { %2155 = vmatmul.mubr.f32.gmra.mrb[12].mxu1 %v2732_v8 }
 0x164   :  { %2361 = vmatpush3.bf16.msra.mxu1 %v2360_v57  ;;  %2157 = vmatprep.mubr.msk.f32.mxu1 %vm2549_vm1, %v2548_v2 }
 0x165   :  { %2174 = vmatprep.subr.mxu1 %v2548_v2 }
 0x167   :  { %2158 = vmatmul.mubr.f32.gmra.mrb[14].mxu1 %v2754_v27 }
 0x168   :  { %2175 = vmatpush3.msra.mxu1 %v2799_v1  ;;  %2160 = vmatprep.mubr.msk.f32.mxu1 %vm2549_vm1, %v2548_v2 }
 0x169   :  { %2362 = vmatprep.subr.bf16.mxu1 %v2550_v43 }
 0x16b   :  { %2161 = vmatmul.mubr.f32.gmra.mrb[16].mxu1 %v2775_v46 }
 0x16c   :  { %2163 = vmatprep.mubr.msk.f32.mxu1 %vm2549_vm1, %v2548_v2 }
 0x16f   :  { %2164 = vmatmul.mubr.f32.gmra.mrb[18].mxu1 %v2794_v61 }
 0x170   :  { %2176 = vmatprep.mubr.msk.f32.mxu1 %vm2549_vm1, %v2548_v2 }
 0x173   :  { %2177 = vmatmul.mubr.f32.vlgmr.msra.gmra.mrb[10].mxu1 %v2730_v7 }
 0x174   :  { %2364 = vmatpush3.bf16.msra.mxu1 %v2738_v14  ;;  %2179 = vmatprep.mubr.msk.f32.mxu1 %vm2549_vm1, %v2548_v2 }
 0x175   :  { %2365 = vmatprep.subr.bf16.mxu1 %v2550_v43 }
 0x177   :  { %2180 = vmatmul.mubr.f32.gmra.mrb[12].mxu1 %v2748_v21 }
 0x178   :  { %2367 = vmatpush3.bf16.msra.mxu1 %v2777_v47  ;;  %2182 = vmatprep.mubr.msk.f32.mxu1 %vm2549_vm1, %v2548_v2 }
 0x179   :  { %2199 = vmatprep.subr.mxu1 %v2548_v2 }
 0x17b   :  { %2183 = vmatmul.mubr.f32.gmra.mrb[14].mxu1 %v2773_v45 }
 0x17c   :  { %2200 = vmatpush3.msra.mxu1 %v2787_v58  ;;  %2185 = vmatprep.mubr.msk.f32.mxu1 %vm2549_vm1, %v2548_v2 }
 0x17d   :  { %2368 = vmatprep.subr.bf16.mxu1 %v2550_v43 }
 0x17f   :  { %2186 = vmatmul.mubr.f32.gmra.mrb[16].mxu1 %v2792_v60 }
 0x180   :  { %2188 = vmatprep.mubr.msk.f32.mxu1 %vm2549_vm1, %v2548_v2 }
 0x183   :  { %2189 = vmatmul.mubr.f32.gmra.mrb[18].mxu1 %v2809_v12 }
 0x184   :  { %2201 = vmatprep.mubr.msk.f32.mxu1 %vm2549_vm1, %v2548_v2 }
 0x187   :  { %2202 = vmatmul.mubr.f32.vlgmr.msra.gmra.mrb[10].mxu1 %v759_v20 }
 0x188   :  { %2370 = vmatpush3.bf16.msra.mxu1 %v2762_v33  ;;  %2204 = vmatprep.mubr.msk.f32.mxu1 %vm2549_vm1, %v2548_v2 }
 0x189   :  { %2371 = vmatprep.subr.bf16.mxu1 %v2550_v43 }
 0x18b   :  { %2205 = vmatmul.mubr.f32.gmra.mrb[12].mxu1 %v769_v36 }
 0x18c   :  { %2373 = vmatpush3.bf16.msra.mxu1 %v2796_v0  ;;  %2207 = vmatprep.mubr.msk.f32.mxu1 %vm2549_vm1, %v2548_v2 }
 0x18d   :  { %2224 = vmatprep.subr.mxu1 %v2548_v2 }
 0x18f   :  { %2208 = vmatmul.mubr.f32.gmra.mrb[14].mxu1 %v779_v59 }
 0x190   :  { %2225 = vmatpush3.msra.mxu1 %v838_v9  ;;  %2210 = vmatprep.mubr.msk.f32.mxu1 %vm2549_vm1, %v2548_v2 }
 0x191   :  { %2374 = vmatprep.subr.bf16.mxu1 %v2550_v43 }
 0x193   :  { %2211 = vmatmul.mubr.f32.gmra.mrb[16].mxu1 %v789_v11 }
 0x194   :  { %2213 = vmatprep.mubr.msk.f32.mxu1 %vm2549_vm1, %v2548_v2 }
 0x197   :  { %2214 = vmatmul.mubr.f32.gmra.mrb[18].mxu1 %v799_v19 }
 0x198   :  { %2226 = vmatprep.mubr.msk.f32.mxu1 %vm2549_vm1, %v2548_v2 }
 0x19b   :  { %2227 = vmatmul.mubr.f32.vlgmr.msra.gmra.mrb[10].mxu1 %v2724_v62 }
 0x19c   :  { %2376 = vmatpush3.bf16.msra.mxu1 %v2738_v14  ;;  %2229 = vmatprep.mubr.msk.f32.mxu1 %vm2549_vm1, %v2548_v2 }
 0x19d   :  { %2377 = vmatprep.subr.bf16.mxu1 %v2550_v43 }
 0x19f   :  { %2230 = vmatmul.mubr.f32.gmra.mrb[12].mxu1 %v2732_v8 }
 0x1a0   :  { %2379 = vmatpush3.bf16.msra.mxu1 %v2777_v47  ;;  %2232 = vmatprep.mubr.msk.f32.mxu1 %vm2549_vm1, %v2548_v2 }
 0x1a1   :  { %2249 = vmatprep.subr.mxu1 %v2548_v2 }
 0x1a3   :  { %2233 = vmatmul.mubr.f32.gmra.mrb[14].mxu1 %v2754_v27 }
 0x1a4   :  { %2250 = vmatpush3.msra.mxu1 %v2787_v58  ;;  %2235 = vmatprep.mubr.msk.f32.mxu1 %vm2549_vm1, %v2548_v2 }
 0x1a5   :  { %2380 = vmatprep.subr.bf16.mxu1 %v2550_v43 }
 0x1a7   :  { %2236 = vmatmul.mubr.f32.gmra.mrb[16].mxu1 %v2775_v46 }
 0x1a8   :  { %2238 = vmatprep.mubr.msk.f32.mxu1 %vm2549_vm1, %v2548_v2 }
 0x1ab   :  { %2239 = vmatmul.mubr.f32.gmra.mrb[18].mxu1 %v2794_v61 }
 0x1ac   :  { %2251 = vmatprep.mubr.msk.f32.mxu1 %vm2549_vm1, %v2548_v2 }
 0x1af   :  { %2252 = vmatmul.mubr.f32.vlgmr.msra.gmra.mrb[10].mxu1 %v2724_v62 }
 0x1b0   :  { %2254 = vmatprep.mubr.msk.f32.mxu1 %vm2549_vm1, %v2548_v2 }
 0x1b3   :  { %2255 = vmatmul.mubr.f32.gmra.mrb[12].mxu1 %v2732_v8 }
 0x1b4   :  { %2257 = vmatprep.mubr.msk.f32.mxu1 %vm2549_vm1, %v2548_v2 }
 0x1b7   :  { %2258 = vmatmul.mubr.f32.gmra.mrb[14].mxu1 %v2754_v27 }
 0x1b8   :  { %2260 = vmatprep.mubr.msk.f32.mxu1 %vm2549_vm1, %v2548_v2 }
 0x1bb   :  { %2261 = vmatmul.mubr.f32.gmra.mrb[16].mxu1 %v2775_v46 }
 0x1bc   :  { %2263 = vmatprep.mubr.msk.f32.mxu1 %vm2549_vm1, %v2548_v2 }
 0x1bf   :  { %2264 = vmatmul.mubr.f32.gmra.mrb[18].mxu1 %v2794_v61 }
 0x1c0   :  { %2276 = vmatprep.mubr.msk.f32.mxu1 %vm2549_vm1, %v2548_v2 }
 0x282   :  { %v1329_v62 = vpop.f32.mrb[10].mxu1 }
 0x283   :  { %v1357_v4 = vmax.f32 %v1329_v62, 0.0  ;;  %v2253_v7 = vpop.f32.mrb[11].mxu1 }
 0x285   :  { %v1369_v8 = vand.u32 4294901760, %v1357_v4 }
 0x286   :  { %v1335_v14 = vpop.f32.mrb[12].mxu1 }
 0x287   :  { %v2939_v20 = vsub.f32 %v1357_v4, %v1369_v8  ;;  %v1358_v21 = vmax.f32 %v1335_v14, 0.0  ;;  %v2256_v26 = vpop.f32.mrb[13].mxu1 }
 0x289   :  { %v1372_v27 = vand.u32 4294901760, %v1358_v21  ;;  %v1451_v29 = vand.u32 4294901760, %v2939_v20 }
 0x28a   :  { %v1341_v30 = vpop.f32.mrb[14].mxu1 }
 0x28b   :  { %v2943_v31 = vpack.c.bf16 %v1372_v27, %v1369_v8  ;;  %v1457_v32 = vsub.f32 %v1358_v21, %v1372_v27  ;;  %v1359_v33 = vmax.f32 %v1341_v30, 0.0  ;;  %v2259_v34 = vpop.f32.mrb[15].mxu1  ;;  %v1452_v39 = vsub.f32 %v2939_v20, %v1451_v29 }
 0x28d   :  { %v1458_v36 = vand.u32 4294901760, %v1457_v32  ;;  %v2393_v37 = vpack.c.bf16 %v1457_v32, %v2939_v20  ;;  %v1375_v38 = vand.u32 4294901760, %v1359_v33  ;;  %2382 = vmatpush3.bf16.msra.mxu1 %v2943_v31  ;;  %v1453_v53 = vand.u32 4294901760, %v1452_v39 }
 0x28e   :  { %v1347_v40 = vpop.f32.mrb[16].mxu1  ;;  %2383 = vmatprep.subr.bf16.mxu1 %v2550_v43 }
 0x28f   :  { %v1459_v42 = vsub.f32 %v1457_v32, %v1458_v36  ;;  %v1464_v44 = vsub.f32 %v1359_v33, %v1375_v38  ;;  %v1360_v45 = vmax.f32 %v1347_v40, 0.0  ;;  %v2262_v46 = vpop.f32.mrb[17].mxu1  ;;  %v2405_v47 = vpack.c.bf16 %v1458_v36, %v1451_v29 }
 0x291   :  { %v1460_v49 = vand.u32 4294901760, %v1459_v42  ;;  %v1465_v50 = vand.u32 4294901760, %v1464_v44  ;;  %v1378_v51 = vand.u32 4294901760, %v1360_v45 }
 0x292   :  { %v1353_v52 = vpop.f32.mrb[18].mxu1 }
 0x293   :  { %v2384_v55 = vpack.c.bf16 %v1378_v51, %v1375_v38  ;;  %v1471_v56 = vsub.f32 %v1360_v45, %v1378_v51  ;;  %v1361_v57 = vmax.f32 %v1353_v52, 0.0  ;;  %v2265_v58 = vpop.f32.mrb[19].mxu1  ;;  %v2387_v59 = vpack.c.bf16 %v1460_v49, %v1453_v53 }
 0x294   :  { %v1466_v60 = vsub.f32 %v1464_v44, %v1465_v50 }
 0x295   :  { %v1472_v61 = vand.u32 4294901760, %v1471_v56  ;;  %v2396_v63 = vpack.c.bf16 %v1471_v56, %v1464_v44  ;;  %v1366_v0 = vsel %vm683_vm4, %v1361_v57, 0  ;;  %2385 = vmatpush3.bf16.msra.mxu1 %v2384_v55  ;;  %2388 = vmatpush3.bf16.msra.mxu0 %v2387_v59 }
 0x296   :  { %v1381_v1 = vand.u32 4294901760, %v1366_v0  ;;  %2274 = vmatprep.subr.mxu1 %v2548_v2  ;;  %2389 = vmatprep.subr.bf16.mxu0 %v2550_v43  ;;  %v1467_v10 = vand.u32 4294901760, %v1466_v60 }
 0x297   :  { %v1473_v5 = vsub.f32 %v1471_v56, %v1472_v61  ;;  %v2408_v6 = vpack.c.bf16 %v1472_v61, %v1465_v50 }
 0x298   :  { %v1478_v9 = vsub.f32 %v1366_v0, %v1381_v1 }
 0x299   :  { %v1474_v11 = vand.u32 4294901760, %v1473_v5  ;;  %2275 = vmatpush3.msra.mxu1 %v1381_v1 }
 0x29a   :  { %v1479_v12 = vand.u32 4294901760, %v1478_v9  ;;  %2277 = vmatmul.mubr.f32.vlgmr.msra.gmra.mrb[20].mxu1 %v1442_v3 }
 0x29b   :  { %v2390_v13 = vpack.c.bf16 %v1474_v11, %v1467_v10 }
 0x29c   :  { %v1480_v16 = vsub.f32 %v1478_v9, %v1479_v12 }
 0x29d   :  { %2391 = vmatpush3.bf16.msra.mxu0 %v2390_v13 }
 0x29e   :  { %2287 = vmatprep.subr.mxu0 %v2548_v2  ;;  %v1481_v17 = vand.u32 4294901760, %v1480_v16 }
 0x2a1   :  { %2288 = vmatpush3.msra.mxu0 %v1481_v17 }
 0x2a2   :  { %2392 = vmatprep.subr.bf16.mxu0 %v2550_v43  ;;  %2290 = vmatmul.mubr.f32.vlgmr.msra.gmra.mrb[10].mxu0 %v2945_v35 }
 0x2a3   :  { %2394 = vmatpush3.bf16.msra.mxu0 %v2393_v37  ;;  %2302 = vmatprep.mubr.msk.f32.mxu0 %vm2549_vm1, %v2548_v2 }
 0x2a4   :  { %2395 = vmatprep.subr.bf16.mxu0 %v2550_v43 }
 0x2a7   :  { %2397 = vmatpush3.bf16.msra.mxu0 %v2396_v63 }
 0x2a8   :  { %2300 = vmatprep.subr.mxu0 %v2548_v2 }
 0x2ab   :  { %2301 = vmatpush3.msra.mxu0 %v1478_v9 }
 0x2ac   :  { %2398 = vmatprep.subr.bf16.mxu0 %v2550_v43  ;;  %2303 = vmatmul.mubr.f32.vlgmr.msra.gmra.mrb[10].mxu0 %v1439_v41 }
 0x2ad   :  { %2400 = vmatpush3.bf16.msra.mxu0 %v2943_v31  ;;  %2315 = vmatprep.mubr.msk.f32.mxu0 %vm2549_vm1, %v2548_v2 }
 0x2ae   :  { %2401 = vmatprep.subr.bf16.mxu0 %v2550_v43 }
 0x2b1   :  { %2403 = vmatpush3.bf16.msra.mxu0 %v2384_v55 }
 0x2b2   :  { %2313 = vmatprep.subr.mxu0 %v2548_v2 }
 0x2b5   :  { %2314 = vmatpush3.msra.mxu0 %v1381_v1 }
 0x2b6   :  { %2404 = vmatprep.subr.bf16.mxu0 %v2550_v43  ;;  %2316 = vmatmul.mubr.f32.vlgmr.msra.gmra.mrb[10].mxu0 %v1440_v48 }
 0x2b7   :  { %2406 = vmatpush3.bf16.msra.mxu0 %v2405_v47  ;;  %2328 = vmatprep.mubr.msk.f32.mxu0 %vm2549_vm1, %v2548_v2 }
 0x2b8   :  { %2407 = vmatprep.subr.bf16.mxu0 %v2550_v43 }
 0x2bb   :  { %2409 = vmatpush3.bf16.msra.mxu0 %v2408_v6 }
 0x2bc   :  { %2326 = vmatprep.subr.mxu0 %v2548_v2 }
 0x2bf   :  { %2327 = vmatpush3.msra.mxu0 %v1479_v12 }
 0x2c0   :  { %2410 = vmatprep.subr.bf16.mxu0 %v2550_v43  ;;  %2329 = vmatmul.mubr.f32.vlgmr.msra.gmra.mrb[10].mxu0 %v2945_v35 }
 0x2c1   :  { %2412 = vmatpush3.bf16.msra.mxu0 %v2943_v31  ;;  %2341 = vmatprep.mubr.msk.f32.mxu0 %vm2549_vm1, %v2548_v2 }
 0x2c2   :  { %2413 = vmatprep.subr.bf16.mxu0 %v2550_v43 }
 0x2c5   :  { %2415 = vmatpush3.bf16.msra.mxu0 %v2384_v55 }
 0x2c6   :  { %2339 = vmatprep.subr.mxu0 %v2548_v2 }
 0x2c9   :  { %2340 = vmatpush3.msra.mxu0 %v1381_v1 }
 0x2ca   :  { %2342 = vmatmul.mubr.f32.vlgmr.msra.gmra.mrb[10].mxu0 %v2945_v35 }
 0x36d   :  { %v1444_v18 = vpop.f32.mrb[20].mxu1 }
 0x36e   :  { %v2278_v19 = vpop.f32.mrb[21].mxu1 }
 0x39d   :  { %v1862_v22 = vpop.f32.mrb[10].mxu0 }
 0x39e   :  { %v2421_v23 = vadd.f32 %v1862_v22, %v1444_v18  ;;  %v2343_v24 = vpop.f32.mrb[11].mxu0 }
 0x3a0   :  { %1867 = vst.msk [vmem:[#allocation2] sm:$0x1] %vm1866_vm5, %v2421_v23 }
 0x3a1   :  { %2535 = shalt.err (!%p2532_p4)
}
 0x3a2   :  { %s2536_s9 = scalar_lea.hbm %s2995_s2, 16 }
 0x3a3   :  { %p2537_p5 = scmp.ne.s32.totalorder %s2995_s2, %s2536_s9  ;;  %p2540_p6 = scmp.lt.u32.totalorder %s2536_s9, %s2995_s2 }
 0x3a5   :  { %p2542_p7 = pnand %p2540_p6, %p2537_p5 }
 0x3a7   :  { %2545 = shalt.err (!%p2542_p7)
}
 0x3a8   :  { %1877 = dma.vmem_to_hbm [thread:$0]  %s1875_s4, 16, %s2995_s2, [#allocation3]  }
 0x3a9   :  { %2546 = dma.done.wait [#allocation3], 16  }
 0x3aa   :  { %2547 = vsyncadd [#allocation3], 4294967280 }
 0x3ab   :  { %1881 = vsyncpa [#allocation3], 1 }

</bundles_post_ra>
